<compile_context>
chip_gen: v5e
topology: v5e:2x2
jax: 0.10.0
libtpu: 0.0.40
codegen_flags: <defaults>
</compile_context>

<pallas_src>
import jax
import jax.numpy as jnp
from jax.experimental import pallas as pl
from jax.experimental.pallas import tpu as pltpu


def dan_kernel(x_ref, wa_ref, ba_ref, wb_ref, bb_ref, wl_ref, bl_ref, o_ref):
    """Fused DAN forward for one batch tile.

    x_ref : (TB, L, 2E)  branch-one / branch-two embeddings stacked on lanes
    wa_ref: (2E, 2H)     blockdiag(W1, W3)      ba_ref: (1, 2H)
    wb_ref: (2H, 40)     blockdiag(W2, W4)      bb_ref: (1, 40)
    wl_ref: (40, out)                           bl_ref: (1, out)
    o_ref : (TB, out)
    """
    # Mean pool over the sequence axis (sublane reduce, VPU).
    pooled = jnp.mean(x_ref[...], axis=1)                         # (TB, 2E)

    # Branch-fused hidden layer: relu(p1 @ W1 + b1 | p2 @ W3 + b3).
    h = jnp.maximum(
        jnp.dot(pooled, wa_ref[...], preferred_element_type=jnp.float32)
        + ba_ref[...],
        0.0)                                                      # (TB, 2H)

    # Branch-fused output layer -> already-concatenated (o1 | o2).
    o40 = (jnp.dot(h, wb_ref[...], preferred_element_type=jnp.float32)
           + bb_ref[...])                                         # (TB, 40)

    # Final linear + sigmoid.
    logits = (jnp.dot(o40, wl_ref[...], preferred_element_type=jnp.float32)
              + bl_ref[...])                                      # (TB, out)
    o_ref[...] = jax.nn.sigmoid(logits).astype(o_ref.dtype)


def dan_forward(in_one, in_two, params, *, tb=8):
    """Embedding gather + layout prep in JAX (glue); hot path in Pallas."""
    emb = params['embedding']
    # Embedding lookup is a gather — done in the wrapper (glue), not the kernel.
    x1 = jnp.take(emb, in_one, axis=0).astype(jnp.float32)        # (B, L, E)
    x2 = jnp.take(emb, in_two, axis=0).astype(jnp.float32)        # (B, L, E)
    x = jnp.concatenate([x1, x2], axis=-1)                        # (B, L, 2E)

    B, L, E2 = x.shape
    E = E2 // 2
    H = params['w1'].shape[1]
    out_size = params['bl'].shape[-1]

    # Build block-diagonal fused weights once (exact: off-blocks are zeros).
    wa = jnp.zeros((2 * E, 2 * H), jnp.float32)
    wa = wa.at[:E, :H].set(params['w1']).at[E:, H:].set(params['w3'])
    ba = jnp.concatenate([params['b1'], params['b3']], axis=-1)[None, :]   # (1, 2H)
    wb = jnp.zeros((2 * H, 40), jnp.float32)
    wb = wb.at[:H, :20].set(params['w2']).at[H:, 20:].set(params['w4'])
    bb = jnp.concatenate([params['b2'], params['b4']], axis=-1)[None, :]   # (1, 40)
    wl = params['wl']                                                      # (40, out)
    bl = params['bl'][None, :]                                             # (1, out)

    # Pad batch to a multiple of tb (sublane-aligned tiles).
    b_pad = ((B + tb - 1) // tb) * tb
    if b_pad != B:
        x = jnp.pad(x, ((0, b_pad - B), (0, 0), (0, 0)))

    grid = (b_pad // tb,)

    out = pl.pallas_call(
        dan_kernel,
        out_shape=jax.ShapeDtypeStruct((b_pad, out_size), jnp.float32),
        grid_spec=pltpu.PrefetchScalarGridSpec(
            num_scalar_prefetch=0,
            grid=grid,
            in_specs=[
                pl.BlockSpec((tb, L, 2 * E), lambda i: (i, 0, 0)),   # x tiles
                pl.BlockSpec((2 * E, 2 * H), lambda i: (0, 0)),      # wa
                pl.BlockSpec((1, 2 * H), lambda i: (0, 0)),          # ba
                pl.BlockSpec((2 * H, 40), lambda i: (0, 0)),         # wb
                pl.BlockSpec((1, 40), lambda i: (0, 0)),             # bb
                pl.BlockSpec((40, out_size), lambda i: (0, 0)),      # wl
                pl.BlockSpec((1, out_size), lambda i: (0, 0)),       # bl
            ],
            out_specs=pl.BlockSpec((tb, out_size), lambda i: (i, 0)),
        ),
        compiler_params=pltpu.CompilerParams(
            dimension_semantics=("parallel",)),
    )(x, wa, ba, wb, bb, wl, bl)

    return out[:B]


def reference_forward(in_one, in_two, params):
    """Pure-JAX reference mirroring the PyTorch forward."""
    emb = params['embedding']
    x1 = jnp.take(emb, in_one, axis=0)
    x2 = jnp.take(emb, in_two, axis=0)
    p1 = jnp.mean(x1, axis=1).astype(jnp.float32)
    p2 = jnp.mean(x2, axis=1).astype(jnp.float32)
    h1 = jax.nn.relu(p1 @ params['w1'] + params['b1'])
    o1 = h1 @ params['w2'] + params['b2']
    h2 = jax.nn.relu(p2 @ params['w3'] + params['b3'])
    o2 = h2 @ params['w4'] + params['b4']
    combined = jnp.concatenate([o1, o2], axis=1)     # (B, 40); Flatten no-op
    return jax.nn.sigmoid(combined @ params['wl'] + params['bl'])


def make_params(key, vocab, embedding_size, hidden_size, output_size):
    ks = jax.random.split(key, 11)

    def u(k, shape, fan_in):
        bound = 1.0 / jnp.sqrt(jnp.float32(fan_in))
        return jax.random.uniform(k, shape, jnp.float32, -bound, bound)

    # PyTorch Linear stores weight (out, in); we store the matmul-transposed
    # (in, out) forms directly.
    return {
        'embedding': jax.random.normal(ks[0], (vocab, embedding_size),
                                       jnp.float32),
        'w1': u(ks[1], (embedding_size, hidden_size), embedding_size),
        'b1': u(ks[2], (hidden_size,), embedding_size),
        'w2': u(ks[3], (hidden_size, 20), hidden_size),
        'b2': u(ks[4], (20,), hidden_size),
        'w3': u(ks[5], (embedding_size, hidden_size), embedding_size),
        'b3': u(ks[6], (hidden_size,), embedding_size),
        'w4': u(ks[7], (hidden_size, 20), hidden_size),
        'b4': u(ks[8], (20,), hidden_size),
        'wl': u(ks[9], (40, output_size), 40),
        'bl': u(ks[10], (output_size,), 40),
    }


if __name__ == "__main__":
    B, L = 2, 8               # batch, sequence length
    VOCAB = 50
    EMBEDDING_SIZE = 16
    HIDDEN = 32
    OUTPUT_SIZE = 2

    key = jax.random.PRNGKey(0)
    kp, k1, k2 = jax.random.split(key, 3)
    params = make_params(kp, VOCAB, EMBEDDING_SIZE, HIDDEN, OUTPUT_SIZE)

    in_one = jax.random.randint(k1, (B, L), 0, VOCAB, dtype=jnp.int32)
    in_two = jax.random.randint(k2, (B, L), 0, VOCAB, dtype=jnp.int32)

    out = jax.block_until_ready(dan_forward(in_one, in_two, params))
    ref = jax.block_until_ready(reference_forward(in_one, in_two, params))

    assert out.shape == (B, OUTPUT_SIZE)
    assert jnp.allclose(out, ref, rtol=1e-4, atol=1e-5), (out, ref)

    print("KERNEL_OK")
</pallas_src>

<mosaic_0001>
module attributes {stable_mosaic.version = 11 : i64} {
  func.func @dan_kernel(%arg0: i32, %arg1: memref<8x8x32xf32, #tpu.memory_space<vmem>>, %arg2: memref<32x64xf32, #tpu.memory_space<vmem>>, %arg3: memref<1x64xf32, #tpu.memory_space<vmem>>, %arg4: memref<64x40xf32, #tpu.memory_space<vmem>>, %arg5: memref<1x40xf32, #tpu.memory_space<vmem>>, %arg6: memref<40x2xf32, #tpu.memory_space<vmem>>, %arg7: memref<1x2xf32, #tpu.memory_space<vmem>>, %arg8: memref<8x2xf32, #tpu.memory_space<vmem>>) attributes {dimension_semantics = [#tpu.dimension_semantics<parallel>], iteration_bounds = array<i64: 1>, scalar_prefetch = 0 : i64, scratch_operands = 0 : i64, tpu.core_type = #tpu.core_type<tc>, window_params = [{transform_indices = @transform_0, window_bounds = array<i64: 8, 8, 32>}, {pipeline_mode = #tpu.pipeline_mode<synchronous>, transform_indices = @transform_1, window_bounds = array<i64: 32, 64>}, {pipeline_mode = #tpu.pipeline_mode<synchronous>, transform_indices = @transform_2, window_bounds = array<i64: 1, 64>}, {pipeline_mode = #tpu.pipeline_mode<synchronous>, transform_indices = @transform_3, window_bounds = array<i64: 64, 40>}, {pipeline_mode = #tpu.pipeline_mode<synchronous>, transform_indices = @transform_4, window_bounds = array<i64: 1, 40>}, {pipeline_mode = #tpu.pipeline_mode<synchronous>, transform_indices = @transform_5, window_bounds = array<i64: 40, 2>}, {pipeline_mode = #tpu.pipeline_mode<synchronous>, transform_indices = @transform_6, window_bounds = array<i64: 1, 2>}, {transform_indices = @transform_7, window_bounds = array<i64: 8, 2>}]} {
    %c0 = arith.constant 0 : index
    %c0_0 = arith.constant 0 : index
    %c0_1 = arith.constant 0 : index
    %0 = vector.load %arg1[%c0, %c0_0, %c0_1] : memref<8x8x32xf32, #tpu.memory_space<vmem>>, vector<8x8x32xf32>
    %cst = arith.constant dense<0.000000e+00> : vector<8x32xf32>
    %1 = vector.multi_reduction <add>, %0, %cst [1] : vector<8x8x32xf32> to vector<8x32xf32>
    %cst_2 = arith.constant 8.000000e+00 : f32
    %2 = vector.broadcast %cst_2 : f32 to vector<8x32xf32>
    %3 = arith.divf %1, %2 : vector<8x32xf32>
    %c0_3 = arith.constant 0 : index
    %c0_4 = arith.constant 0 : index
    %4 = vector.load %arg2[%c0_3, %c0_4] : memref<32x64xf32, #tpu.memory_space<vmem>>, vector<32x64xf32>
    %cst_5 = arith.constant dense<0.000000e+00> : vector<8x64xf32>
    %5 = tpu.matmul %3, %4, %cst_5 {dimension_numbers = #tpu.dot_dimension_numbers<[1], [0], [0], [1], [0, 0, 1, 1], [], []>} : vector<8x32xf32>, vector<32x64xf32>, vector<8x64xf32> -> vector<8x64xf32>
    %c0_6 = arith.constant 0 : index
    %c0_7 = arith.constant 0 : index
    %6 = vector.load %arg3[%c0_6, %c0_7] : memref<1x64xf32, #tpu.memory_space<vmem>>, vector<1x64xf32>
    %7 = vector.broadcast %6 : vector<1x64xf32> to vector<8x64xf32>
    %8 = arith.addf %5, %7 : vector<8x64xf32>
    %cst_8 = arith.constant 0.000000e+00 : f32
    %9 = vector.broadcast %cst_8 : f32 to vector<8x64xf32>
    %10 = arith.maximumf %8, %9 : vector<8x64xf32>
    %c0_9 = arith.constant 0 : index
    %c0_10 = arith.constant 0 : index
    %11 = vector.load %arg4[%c0_9, %c0_10] : memref<64x40xf32, #tpu.memory_space<vmem>>, vector<64x40xf32>
    %cst_11 = arith.constant dense<0.000000e+00> : vector<8x40xf32>
    %12 = tpu.matmul %10, %11, %cst_11 {dimension_numbers = #tpu.dot_dimension_numbers<[1], [0], [0], [1], [0, 0, 1, 1], [], []>} : vector<8x64xf32>, vector<64x40xf32>, vector<8x40xf32> -> vector<8x40xf32>
    %c0_12 = arith.constant 0 : index
    %c0_13 = arith.constant 0 : index
    %13 = vector.load %arg5[%c0_12, %c0_13] : memref<1x40xf32, #tpu.memory_space<vmem>>, vector<1x40xf32>
    %14 = vector.broadcast %13 : vector<1x40xf32> to vector<8x40xf32>
    %15 = arith.addf %12, %14 : vector<8x40xf32>
    %c0_14 = arith.constant 0 : index
    %c0_15 = arith.constant 0 : index
    %16 = vector.load %arg6[%c0_14, %c0_15] : memref<40x2xf32, #tpu.memory_space<vmem>>, vector<40x2xf32>
    %cst_16 = arith.constant dense<0.000000e+00> : vector<8x2xf32>
    %17 = tpu.matmul %15, %16, %cst_16 {dimension_numbers = #tpu.dot_dimension_numbers<[1], [0], [0], [1], [0, 0, 1, 1], [], []>} : vector<8x40xf32>, vector<40x2xf32>, vector<8x2xf32> -> vector<8x2xf32>
    %c0_17 = arith.constant 0 : index
    %c0_18 = arith.constant 0 : index
    %18 = vector.load %arg7[%c0_17, %c0_18] : memref<1x2xf32, #tpu.memory_space<vmem>>, vector<1x2xf32>
    %19 = vector.broadcast %18 : vector<1x2xf32> to vector<8x2xf32>
    %20 = arith.addf %17, %19 : vector<8x2xf32>
    %21 = arith.negf %20 : vector<8x2xf32>
    %22 = math.exp %21 : vector<8x2xf32>
    %cst_19 = arith.constant 1.000000e+00 : f32
    %23 = vector.broadcast %cst_19 : f32 to vector<8x2xf32>
    %24 = arith.addf %23, %22 : vector<8x2xf32>
    %25 = arith.divf %23, %24 : vector<8x2xf32>
    %c0_20 = arith.constant 0 : index
    %c0_21 = arith.constant 0 : index
    %26 = vector.load %arg8[%c0_20, %c0_21] : memref<8x2xf32, #tpu.memory_space<vmem>>, vector<8x2xf32>
    tpu.vector_store %arg8[%c0_20, %c0_21], %25 {strides = array<i32>} : memref<8x2xf32, #tpu.memory_space<vmem>>, vector<8x2xf32>,
    return
  }
  func.func @transform_0(%arg0: i32) -> (i32, i32, i32) {
    %c0_i32 = arith.constant 0 : i32
    %c0_i32_0 = arith.constant 0 : i32
    %c0_i32_1 = arith.constant 0 : i32
    return %arg0, %c0_i32, %c0_i32_0 : i32, i32, i32
  }
  func.func @transform_1(%arg0: i32) -> (i32, i32) {
    %c0_i32 = arith.constant 0 : i32
    %c0_i32_0 = arith.constant 0 : i32
    %c0_i32_1 = arith.constant 0 : i32
    return %c0_i32, %c0_i32_0 : i32, i32
  }
  func.func @transform_2(%arg0: i32) -> (i32, i32) {
    %c0_i32 = arith.constant 0 : i32
    %c0_i32_0 = arith.constant 0 : i32
    %c0_i32_1 = arith.constant 0 : i32
    return %c0_i32, %c0_i32_0 : i32, i32
  }
  func.func @transform_3(%arg0: i32) -> (i32, i32) {
    %c0_i32 = arith.constant 0 : i32
    %c0_i32_0 = arith.constant 0 : i32
    %c0_i32_1 = arith.constant 0 : i32
    return %c0_i32, %c0_i32_0 : i32, i32
  }
  func.func @transform_4(%arg0: i32) -> (i32, i32) {
    %c0_i32 = arith.constant 0 : i32
    %c0_i32_0 = arith.constant 0 : i32
    %c0_i32_1 = arith.constant 0 : i32
    return %c0_i32, %c0_i32_0 : i32, i32
  }
  func.func @transform_5(%arg0: i32) -> (i32, i32) {
    %c0_i32 = arith.constant 0 : i32
    %c0_i32_0 = arith.constant 0 : i32
    %c0_i32_1 = arith.constant 0 : i32
    return %c0_i32, %c0_i32_0 : i32, i32
  }
  func.func @transform_6(%arg0: i32) -> (i32, i32) {
    %c0_i32 = arith.constant 0 : i32
    %c0_i32_0 = arith.constant 0 : i32
    %c0_i32_1 = arith.constant 0 : i32
    return %c0_i32, %c0_i32_0 : i32, i32
  }
  func.func @transform_7(%arg0: i32) -> (i32, i32) {
    %c0_i32 = arith.constant 0 : i32
    %c0_i32_0 = arith.constant 0 : i32
    return %arg0, %c0_i32 : i32, i32
  }
}

</mosaic_0001>

<bundles_post_ra>
// kernel: tpu_custom_call.1
= control target key start
LH: loop header
LB: loop body
LE: loop exit
PB: predicated region body
PF: predicated region fallthrough
CT: control target
= control target key end

     0   :  { %vm34_vm0 = vcmask 261120   ;;  %v267_v17 = vmov 8.0   ;;  %vm122_vm2 = vcmask 1041409   ;;  %vm124_vm3 = vcmask 1042434   ;;  %s404_s1 = inlined_call_operand.vmem [shape: f32[32,64], index: 1, kind: input, shape index: {}]   ;;  %s405_s0 = inlined_call_operand.vmem [shape: f32[8,8,32], index: 0, kind: input, shape index: {}]   ;;  %s406_s3 = inlined_call_operand.vmem [shape: f32[64,40], index: 3, kind: input, shape index: {}]   ;;  %s407_s2 = inlined_call_operand.vmem [shape: f32[1,64], index: 2, kind: input, shape index: {}]   ;;  %s408_s4 = inlined_call_operand.vmem [shape: f32[1,40], index: 4, kind: input, shape index: {}]   ;;  %s409_s5 = inlined_call_operand.vmem [shape: f32[40,2], index: 5, kind: input, shape index: {}]   ;;  %s410_s6 = inlined_call_operand.vmem [shape: f32[1,2], index: 6, kind: input, shape index: {}]   ;;  %s411_s7 = inlined_call_operand.vmem [shape: f32[8,2], index: 7, kind: output, shape index: {}]  }
   0x1   :  { %v109_v0 = vld [vmem:[%s404_s1 + $0x18] sm:$0xff]  ;;  %v108_v1 = vld [vmem:[%s404_s1 + $0x10] sm:$0xff]  ;;  %v107_v2 = vld [vmem:[%s404_s1 + $0x8] sm:$0xff]  ;;  %261 = vrcp.f32 %v267_v17  ;;  %vm126_vm4 = vcmask 1043459   ;;  %vm128_vm5 = vcmask 1044484   ;;  %vm130_vm6 = vcmask 1045509  }
   0x2   :  { %150 = vmatpush.msra.mxu0 %v109_v0  ;;  %v26_v3 = vld [vmem:[%s405_s0] sm:$0xff]  ;;  %v27_v4 = vld [vmem:[%s405_s0 + $0x8] sm:$0xff]  ;;  %v28_v6 = vld [vmem:[%s405_s0 + $0x10] sm:$0xff]  ;;  %vm132_vm7 = vcmask 1046534   ;;  %vm134_vm8 = vcmask 1047559   ;;  %vm171_vm9 = vcmask 523264  }
   0x3   :  { %v106_v5 = vld [vmem:[%s404_s1] sm:$0xff]  ;;  %v29_v7 = vld [vmem:[%s405_s0 + $0x18] sm:$0xff]  ;;  %v35_v9 = vsel %vm34_vm0, %v26_v3, 0.0  ;;  %v42_v10 = vsel %vm34_vm0, %v27_v4, 0.0  ;;  %v31_v11 = vld [vmem:[%s405_s0 + $0x28] sm:$0xff]  ;;  %v49_v16 = vsel %vm34_vm0, %v28_v6, 0.0 }
   0x4   :  { %v30_v8 = vld [vmem:[%s405_s0 + $0x20] sm:$0xff]  ;;  %151 = vmatpush.msra.mxu0 %v108_v1  ;;  %v32_v12 = vld [vmem:[%s405_s0 + $0x30] sm:$0xff]  ;;  %v33_v13 = vld [vmem:[%s405_s0 + $0x38] sm:$0xff]  ;;  %v36_v14 = vrot.slane %v35_v9, 4  ;;  %v43_v15 = vrot.slane %v42_v10, 4  ;;  %v50_v18 = vrot.slane %v49_v16, 4 }
   0x5   :  { %v56_v19 = vsel %vm34_vm0, %v29_v7, 0.0  ;;  %v63_v20 = vsel %vm34_vm0, %v30_v8, 0.0  ;;  %v70_v21 = vsel %vm34_vm0, %v31_v11, 0.0  ;;  %v166_v22 = vld [vmem:[%s406_s3 + $0x38] sm:$0xff]  ;;  %v165_v23 = vld [vmem:[%s406_s3 + $0x30] sm:$0xff]  ;;  %v77_v30 = vsel %vm34_vm0, %v32_v12, 0.0 }
   0x6   :  { %152 = vmatpush.msra.mxu0 %v107_v2  ;;  %v37_v24 = vadd.f32 %v36_v14, %v35_v9  ;;  %v44_v25 = vadd.f32 %v43_v15, %v42_v10  ;;  %v57_v26 = vrot.slane %v56_v19, 4  ;;  %v64_v27 = vrot.slane %v63_v20, 4  ;;  %183 = vmatpush.msra.mxu1 %v166_v22  ;;  %v164_v32 = vld [vmem:[%s406_s3 + $0x28] sm:$0xff]  ;;  %v163_v41 = vld [vmem:[%s406_s3 + $0x20] sm:$0xff]  ;;  %v162_v48 = vld [vmem:[%s406_s3 + $0x18] sm:$0xff] }
   0x7   :  { %v51_v28 = vadd.f32 %v50_v18, %v49_v16  ;;  %v71_v29 = vrot.slane %v70_v21, 4  ;;  %v84_v31 = vsel %vm34_vm0, %v33_v13, 0.0  ;;  %v78_v39 = vrot.slane %v77_v30, 4  ;;  %v262_v42 = vpop.eup %261 }
   0x8   :  { %153 = vmatpush.msra.mxu0 %v106_v5  ;;  %v38_v33 = vrot.slane %v37_v24, 2  ;;  %v45_v34 = vrot.slane %v44_v25, 2  ;;  %v58_v35 = vadd.f32 %v57_v26, %v56_v19  ;;  %v65_v36 = vadd.f32 %v64_v27, %v63_v20  ;;  %184 = vmatpush.msra.mxu1 %v165_v23 }
   0x9   :  { %v52_v37 = vrot.slane %v51_v28, 2  ;;  %v72_v38 = vadd.f32 %v71_v29, %v70_v21  ;;  %v85_v40 = vrot.slane %v84_v31, 4  ;;  %v79_v46 = vadd.f32 %v78_v39, %v77_v30 }
   0xa   :  { %v59_v43 = vrot.slane %v58_v35, 2  ;;  %v66_v44 = vrot.slane %v65_v36, 2  ;;  %185 = vmatpush.msra.mxu1 %v164_v32  ;;  %v39_v49 = vadd.f32 %v38_v33, %v37_v24  ;;  %v46_v50 = vadd.f32 %v45_v34, %v44_v25  ;;  %v160_v32 = vld [vmem:[%s406_s3 + $0x8] sm:$0xff]  ;;  %v159_v33 = vld [vmem:[%s406_s3] sm:$0xff] }
   0xb   :  { %v73_v45 = vrot.slane %v72_v38, 2  ;;  %v86_v47 = vadd.f32 %v85_v40, %v84_v31  ;;  %v53_v51 = vadd.f32 %v52_v37, %v51_v28  ;;  %v80_v53 = vrot.slane %v79_v46, 2  ;;  %v161_v31 = vld [vmem:[%s406_s3 + $0x10] sm:$0xff]  ;;  %v199_v34 = vld [vmem:[%s409_s5 + $0x20] sm:$0xff] }
   0xc   :  { %186 = vmatpush.msra.mxu1 %v163_v41  ;;  %v60_v52 = vadd.f32 %v59_v43, %v58_v35  ;;  %v67_v55 = vadd.f32 %v66_v44, %v65_v36  ;;  %v40_v57 = vrot.slane %v39_v49, 1  ;;  %v92_v60 = vmul.f32 8.0, %v262_v42  ;;  %v198_v35 = vld [vmem:[%s409_s5 + $0x18] sm:$0xff]  ;;  %219 = vmatpush.msra.mxu2 %v199_v34  ;;  %v197_v36 = vld [vmem:[%s409_s5 + $0x10] sm:$0xff]  ;;  %v258_v37 = vld [vmem:[%s407_s2] ss:$0 sm:$0xff] }
   0xd   :  { %v87_v54 = vrot.slane %v86_v47, 2  ;;  %v74_v56 = vadd.f32 %v73_v45, %v72_v38  ;;  %v81_v58 = vadd.f32 %v80_v53, %v79_v46  ;;  %v47_v61 = vrot.slane %v46_v50, 1  ;;  %v196_v41 = vld [vmem:[%s409_s5 + $0x8] sm:$0xff]  ;;  %v259_v43 = vld [vmem:[%s408_s4] ss:$0 sm:$0xff] }
   0xe   :  { %187 = vmatpush.msra.mxu1 %v162_v48  ;;  %v54_v62 = vrot.slane %v53_v51, 1  ;;  %v61_v63 = vrot.slane %v60_v52, 1  ;;  %v68_v0 = vrot.slane %v67_v55, 1  ;;  %v93_v1 = vsub.f32 1.0, %v92_v60  ;;  %220 = vmatpush.msra.mxu2 %v198_v35  ;;  %v260_v46 = vld [vmem:[%s410_s6] ss:$0 sm:$0xff] }
   0xf   :  { %v88_v59 = vadd.f32 %v87_v54, %v86_v47  ;;  %v75_v2 = vrot.slane %v74_v56, 1  ;;  %v41_v3 = vadd.f32 %v40_v57, %v39_v49  ;;  %v82_v4 = vrot.slane %v81_v58, 1 }
  0x10   :  { %v94_v6 = vmul.f32 %v262_v42, %v93_v1  ;;  %v48_v7 = vadd.f32 %v47_v61, %v46_v50  ;;  %v55_v8 = vadd.f32 %v54_v62, %v53_v51  ;;  %v62_v9 = vadd.f32 %v61_v63, %v60_v52  ;;  %188 = vmatpush.msra.mxu1 %v161_v31 }
  0x11   :  { %v89_v5 = vrot.slane %v88_v59, 1  ;;  %vm96_vm1 = vweird.f32 %v262_v42  ;;  %v69_v10 = vadd.f32 %v68_v0, %v67_v55  ;;  %v76_v12 = vadd.f32 %v75_v2, %v74_v56  ;;  %221 = vmatpush.msra.mxu2 %v197_v36 }
  0x12   :  { %v95_v11 = vadd.f32 %v262_v42, %v94_v6  ;;  %v83_v13 = vadd.f32 %v82_v4, %v81_v58  ;;  %189 = vmatpush.msra.mxu1 %v160_v32  ;;  %vm204_vm10 = vcmask 326656   ;;  %vm247_vm14 = vcmask 15360  }
  0x13   :  { %v90_v14 = vadd.f32 %v89_v5, %v88_v59  ;;  %222 = vmatpush.msra.mxu2 %v196_v41 }
  0x14   :  { %v97_v15 = vsel %vm96_vm1, %v262_v42, %v95_v11  ;;  %190 = vmatpush.msra.mxu1 %v159_v33  ;;  %v195_v42 = vld [vmem:[%s409_s5] sm:$0xff] }
  0x15   :  { %v98_v16 = vmul.f32 %v97_v15, %v41_v3  ;;  %v99_v17 = vmul.f32 %v97_v15, %v48_v7  ;;  %v100_v18 = vmul.f32 %v97_v15, %v55_v8  ;;  %v101_v19 = vmul.f32 %v97_v15, %v62_v9  ;;  %223 = vmatpush.msra.mxu2 %v195_v42 }
  0x16   :  { %v102_v20 = vmul.f32 %v97_v15, %v69_v10  ;;  %v103_v21 = vmul.f32 %v97_v15, %v76_v12  ;;  %v104_v23 = vmul.f32 %v97_v15, %v83_v13  ;;  %v105_v25 = vmul.f32 %v97_v15, %v90_v14 }
  0x17   :  { %v123_v22 = vsel %vm122_vm2, %v99_v17, %v98_v16 }
  0x18   :  { %v125_v24 = vsel %vm124_vm3, %v100_v18, %v123_v22 }
  0x19   :  { %v127_v26 = vsel %vm126_vm4, %v101_v19, %v125_v24 }
  0x1a   :  { %v129_v27 = vsel %vm128_vm5, %v102_v20, %v127_v26 }
  0x1b   :  { %v131_v28 = vsel %vm130_vm6, %v103_v21, %v129_v27 }
  0x1c   :  { %v133_v29 = vsel %vm132_vm7, %v104_v23, %v131_v28 }
  0x1d   :  { %v135_v30 = vsel %vm134_vm8, %v105_v25, %v133_v29 }
  0x1e   :  { %253 = vmatmul.msk.f32.vlgmr.msra.gmra.mxu0 %vm34_vm0, %v135_v30 }
  0x9b   :  { %v155_v38 = vpop.f32.mrf.mxu0 }
  0x9c   :  { %v156_v39 = vadd.f32 %v258_v37, %v155_v38 }
  0x9e   :  { %v158_v40 = vmax.f32 %v156_v39, 0.0 }
  0xa0   :  { %254 = vmatmul.msk.f32.vlgmr.msra.gmra.mxu1 %vm171_vm9, %v158_v40 }
 0x11d   :  { %v192_v44 = vpop.f32.mrf.mxu1 }
 0x11e   :  { %v193_v45 = vadd.f32 %v259_v43, %v192_v44 }
 0x120   :  { %255 = vmatmul.msk.f32.vlgmr.msra.gmra.mxu2 %vm204_vm10, %v193_v45 }
 0x1a3   :  { %v225_v47 = vpop.f32.mrf.mxu2 }
 0x1a4   :  { %v226_v48 = vadd.f32 %v260_v46, %v225_v47 }
 0x1a6   :  { %v256_v49 = vmul.f32 -1.442695, %v226_v48 }
 0x1a8   :  { %263 = vpow2.f32 %v256_v49 }
 0x1ae   :  { %v264_v50 = vpop.eup %263 }
 0x1af   :  { %v231_v51 = vadd.f32 1.0, %v264_v50 }
 0x1b1   :  { %265 = vrcp.f32 %v231_v51  ;;  %v243_v55 = vand.u32 2147483648, %v231_v51  ;;  %v241_v57 = vand.u32 2147483647, %v231_v51  ;;  %vm237_vm12 = vweird.f32 %v231_v51 }
 0x1b3   :  { %v244_v59 = vor.u32 1.1754944e-38, %v243_v55  ;;  %vm242_vm15 = vcmp.eq.f32.partialorder %v241_v57, 8.507059e+37 }
 0x1b7   :  { %v266_v52 = vpop.eup %265 }
 0x1b8   :  { %v233_v53 = vmul.f32 %v266_v52, %v231_v51  ;;  %vm238_vm11 = vweird.f32 %v266_v52 }
 0x1b9   :  { %vm239_vm13 = vmor %vm237_vm12, %vm238_vm11 }
 0x1ba   :  { %v234_v54 = vsub.f32 1.0, %v233_v53 }
 0x1bc   :  { %v235_v56 = vmul.f32 %v266_v52, %v234_v54 }
 0x1be   :  { %v236_v58 = vadd.f32 %v266_v52, %v235_v56 }
 0x1c0   :  { %v240_v60 = vsel %vm239_vm13, %v266_v52, %v236_v58 }
 0x1c1   :  { %v245_v61 = vsel %vm242_vm15, %v244_v59, %v240_v60 }
 0x1c2   :  { %248 = vst.msk [vmem:[%s411_s7] sm:$0xff] %vm247_vm14, %v245_v61 }

</bundles_post_ra>
